<compile_context>
chip_gen: v6e
topology: v6e:2x2x1
jax: 0.10.0
libtpu: 0.0.40
codegen_flags: <defaults>
</compile_context>

<pallas_src>
import functools

import jax
import jax.numpy as jnp
from jax import lax
from jax.experimental import pallas as pl
from jax.experimental.pallas import tpu as pltpu


def _round_up(n, m):
    return ((n + m - 1) // m) * m


def _choose_tiles(batch, input_size, elem_bytes):
    """Pick (tile_b, sub_rows).

    tile_b   : rows of x streamed per grid step, sized by a ~2 MiB byte budget
               (1-4 MiB is the sweet spot for hiding per-step overhead), capped
               at ~half the batch so the grid keeps >= 2 steps (v7x megacore).
    sub_rows : rows per in-kernel matmul sub-tile (bounds vreg pressure).
    tile_b is always a multiple of sub_rows; both are multiples of 8 (x stays
    f32, so 8 rows is the sublane quantum — no bf16 16-row packing concerns).
    """
    row_bytes = input_size * elem_bytes
    target_bytes = 2 * 1024 * 1024
    sub = 256

    rows = max(8, target_bytes // row_bytes)      # rows fitting the byte budget
    if batch <= min(rows, sub):
        tile_b = _round_up(batch, 8)              # one block, one sub-tile
        return tile_b, tile_b
    sub = min(sub, max(8, (rows // 8) * 8))       # very wide inputs: shrink sub
    rows = max(sub, (rows // sub) * sub)
    half = _round_up(pl.cdiv(batch, 2), sub)      # keep >= 2 grid steps
    tile_b = max(sub, min(rows, half))
    return tile_b, sub


def mlp_kernel(x_ref, w1_ref, b1_ref, w2_ref, b2_ref, w3_ref, b3_ref, o_ref,
               *, sub_rows):
    # x_ref: (tile_b, D)  in its incoming dtype (f32 here)
    # w1: (D, 64)  b1: (1, 64)  w2: (64, 32)  b2: (1, 32)
    # w3: (1, 32) row  b3: (1, 1)
    # o_ref: (1, n_sub, sub_rows)  f32
    n_sub = x_ref.shape[0] // sub_rows            # static (block shape is static)

    def body(s, carry):
        r0 = pl.multiple_of(s * sub_rows, sub_rows)
        x = x_ref[pl.ds(r0, sub_rows), :]                                   # (sub, D)

        # Layers 1 & 2 on the MXU, f32 accumulation (MXU has huge slack in this
        # HBM-bound kernel, so f32 matmuls are free and match the f32 module).
        h1 = jnp.dot(x, w1_ref[...],
                     preferred_element_type=jnp.float32) + b1_ref[...]      # (sub, 64)
        h1 = jnp.maximum(h1, 0.0)
        h2 = jnp.dot(h1, w2_ref[...],
                     preferred_element_type=jnp.float32) + b2_ref[...]      # (sub, 32)
        h2 = jnp.maximum(h2, 0.0)

        # Layer 3 (32 -> 1) as w3 @ h2^T -> a lane-dense (1, sub) row, so the
        # store below is a dense row store rather than a masked column store.
        z = lax.dot_general(w3_ref[...], h2, (((1,), (1,)), ((), ())),
                            preferred_element_type=jnp.float32) + b3_ref[...]  # (1, sub)

        # Exact sigmoid (outputs stay in [0, 1]); exp / divide run on the EUP
        # slot, which is idle in this mem-bound kernel.
        sig = 1.0 / (1.0 + jnp.exp(-z))
        o_ref[0, pl.ds(s, 1), :] = sig.astype(o_ref.dtype)
        return carry

    lax.fori_loop(0, n_sub, body, 0, unroll=min(8, n_sub))


def mlp_forward(x, params):
    """x: (batch, input_size). Returns (batch, 1) sigmoid outputs in f32."""
    batch, input_size = x.shape
    h1_dim = params["w1"].shape[1]
    h2_dim = params["w2"].shape[1]
    w3_row = params["w3"].reshape(1, h2_dim).astype(jnp.float32)     # (1, 32)

    tile_b, sub_rows = _choose_tiles(batch, input_size, x.dtype.itemsize)
    n_sub = tile_b // sub_rows
    n_tiles = pl.cdiv(batch, tile_b)      # ragged last block handled by Pallas

    # Advisory scheduling hint for XLA around the custom call.
    flops = 2 * batch * (input_size * h1_dim + h1_dim * h2_dim + h2_dim)
    bytes_accessed = (batch * input_size * x.dtype.itemsize            # x stream
                      + batch * 4                                      # output
                      + 4 * (input_size * h1_dim + h1_dim * h2_dim
                             + h1_dim + 2 * h2_dim + 1))               # weights
    cost = pl.CostEstimate(flops=int(flops), transcendentals=int(batch),
                           bytes_accessed=int(bytes_accessed))

    out = pl.pallas_call(
        functools.partial(mlp_kernel, sub_rows=sub_rows),
        out_shape=jax.ShapeDtypeStruct((n_tiles, n_sub, sub_rows), jnp.float32),
        grid=(n_tiles,),
        in_specs=[
            # x: streamed (tile_b, D) blocks, auto double-buffered DMA.
            pl.BlockSpec((tile_b, input_size), lambda i: (i, 0)),
            # Weights / biases: full blocks, constant index_map -> VMEM-resident.
            pl.BlockSpec((input_size, h1_dim), lambda i: (0, 0)),
            pl.BlockSpec((1, h1_dim), lambda i: (0, 0)),
            pl.BlockSpec((h1_dim, h2_dim), lambda i: (0, 0)),
            pl.BlockSpec((1, h2_dim), lambda i: (0, 0)),
            pl.BlockSpec((1, h2_dim), lambda i: (0, 0)),
            pl.BlockSpec((1, 1), lambda i: (0, 0)),
        ],
        # Lane-dense output: row s of tile i holds sigmoid outputs of batch rows
        # [i*tile_b + s*sub_rows, i*tile_b + (s+1)*sub_rows).
        out_specs=pl.BlockSpec((1, n_sub, sub_rows), lambda i: (i, 0, 0)),
        compiler_params=pltpu.CompilerParams(
            dimension_semantics=("parallel",),      # megacore sharding on v7x
            vmem_limit_bytes=32 * 1024 * 1024,      # ample (<~7 MiB used); v7x-safe
        ),
        cost_estimate=cost,
    )(x, params["w1"], params["b1"], params["w2"], params["b2"], w3_row, params["b3"])

    # Row-major flatten restores batch order; slice off any ragged-tail rows.
    return out.reshape(n_tiles * tile_b, 1)[:batch]


def mlp_reference(x, params):
    """Pure-JAX f32 reference (same math as the PyTorch module)."""
    h1 = jnp.maximum(
        jnp.dot(x, params["w1"], precision=lax.Precision.HIGHEST) + params["b1"], 0.0)
    h2 = jnp.maximum(
        jnp.dot(h1, params["w2"], precision=lax.Precision.HIGHEST) + params["b2"], 0.0)
    z = jnp.dot(h2, params["w3"], precision=lax.Precision.HIGHEST) + params["b3"]
    return 1.0 / (1.0 + jnp.exp(-z))


def init_params(key, input_size):
    """Mimic PyTorch Linear's U(-1/sqrt(fan_in), 1/sqrt(fan_in)) init.

    Weights stored as (in_features, out_features) so the kernel does x @ W + b.
    """
    dims = [(input_size, 64), (64, 32), (32, 1)]
    params = {}
    for i, (fan_in, fan_out) in enumerate(dims, start=1):
        key, kw, kb = jax.random.split(key, 3)
        bound = 1.0 / jnp.sqrt(jnp.float32(fan_in))
        params[f"w{i}"] = jax.random.uniform(
            kw, (fan_in, fan_out), jnp.float32, -bound, bound)
        params[f"b{i}"] = jax.random.uniform(
            kb, (1, fan_out), jnp.float32, -bound, bound)
    return params


if __name__ == "__main__":
    input_size = 32
    key = jax.random.PRNGKey(0)
    key, kp = jax.random.split(key)
    params = init_params(kp, input_size)

    # Small shape implied by the module (feature-vector MLP): batch=8, D=32.
    # The extra sizes exercise the multi-tile grid / sub-loop (1024) and the
    # ragged, non-divisible last block (777) — no host-side padding pass.
    for batch in (8, 1024, 777):
        key, kx = jax.random.split(key)
        x = jax.random.normal(kx, (batch, input_size), jnp.float32)

        out = mlp_forward(x, params)
        jax.block_until_ready(out)

        ref = mlp_reference(x, params)
        assert out.shape == (batch, 1)
        assert jnp.allclose(out, ref, atol=2e-3), f"mismatch vs reference (batch={batch})"

    print("KERNEL_OK")
</pallas_src>

<mosaic_0001>
module attributes {stable_mosaic.version = 11 : i64} {
  func.func @mlp_kernel(%arg0: i32, %arg1: memref<8x32xf32, #tpu.memory_space<vmem>>, %arg2: memref<32x64xf32, #tpu.memory_space<vmem>>, %arg3: memref<1x64xf32, #tpu.memory_space<vmem>>, %arg4: memref<64x32xf32, #tpu.memory_space<vmem>>, %arg5: memref<1x32xf32, #tpu.memory_space<vmem>>, %arg6: memref<1x32xf32, #tpu.memory_space<vmem>>, %arg7: memref<1x1xf32, #tpu.memory_space<vmem>>, %arg8: memref<1x1x8xf32, #tpu.memory_space<vmem>>) attributes {dimension_semantics = [#tpu.dimension_semantics<parallel>], iteration_bounds = array<i64: 1>, scalar_prefetch = 0 : i64, scratch_operands = 0 : i64, tpu.core_type = #tpu.core_type<tc>, window_params = [{transform_indices = @transform_0, window_bounds = array<i64: 8, 32>}, {pipeline_mode = #tpu.pipeline_mode<synchronous>, transform_indices = @transform_1, window_bounds = array<i64: 32, 64>}, {pipeline_mode = #tpu.pipeline_mode<synchronous>, transform_indices = @transform_2, window_bounds = array<i64: 1, 64>}, {pipeline_mode = #tpu.pipeline_mode<synchronous>, transform_indices = @transform_3, window_bounds = array<i64: 64, 32>}, {pipeline_mode = #tpu.pipeline_mode<synchronous>, transform_indices = @transform_4, window_bounds = array<i64: 1, 32>}, {pipeline_mode = #tpu.pipeline_mode<synchronous>, transform_indices = @transform_5, window_bounds = array<i64: 1, 32>}, {pipeline_mode = #tpu.pipeline_mode<synchronous>, transform_indices = @transform_6, window_bounds = array<i64: 1, 1>}, {transform_indices = @transform_7, window_bounds = array<i64: 1, 1, 8>}]} {
    %c0_i32 = arith.constant 0 : i32
    %c8_i32 = arith.constant 8 : i32
    %0 = arith.muli %c0_i32, %c8_i32 : i32
    %1 = tpu.assume_multiple %0, 8 : i32
    %2 = arith.index_cast %1 : i32 to index
    %c0 = arith.constant 0 : index
    %3 = vector.load %arg1[%2, %c0] : memref<8x32xf32, #tpu.memory_space<vmem>>, vector<8x32xf32>
    %c0_0 = arith.constant 0 : index
    %c0_1 = arith.constant 0 : index
    %4 = vector.load %arg2[%c0_0, %c0_1] : memref<32x64xf32, #tpu.memory_space<vmem>>, vector<32x64xf32>
    %cst = arith.constant dense<0.000000e+00> : vector<8x64xf32>
    %5 = tpu.matmul %3, %4, %cst {dimension_numbers = #tpu.dot_dimension_numbers<[1], [0], [0], [1], [0, 0, 1, 1], [], []>} : vector<8x32xf32>, vector<32x64xf32>, vector<8x64xf32> -> vector<8x64xf32>
    %c0_2 = arith.constant 0 : index
    %c0_3 = arith.constant 0 : index
    %6 = vector.load %arg3[%c0_2, %c0_3] : memref<1x64xf32, #tpu.memory_space<vmem>>, vector<1x64xf32>
    %7 = vector.broadcast %6 : vector<1x64xf32> to vector<8x64xf32>
    %8 = arith.addf %5, %7 : vector<8x64xf32>
    %cst_4 = arith.constant 0.000000e+00 : f32
    %9 = vector.broadcast %cst_4 : f32 to vector<8x64xf32>
    %10 = arith.maximumf %8, %9 : vector<8x64xf32>
    %c0_5 = arith.constant 0 : index
    %c0_6 = arith.constant 0 : index
    %11 = vector.load %arg4[%c0_5, %c0_6] : memref<64x32xf32, #tpu.memory_space<vmem>>, vector<64x32xf32>
    %cst_7 = arith.constant dense<0.000000e+00> : vector<8x32xf32>
    %12 = tpu.matmul %10, %11, %cst_7 {dimension_numbers = #tpu.dot_dimension_numbers<[1], [0], [0], [1], [0, 0, 1, 1], [], []>} : vector<8x64xf32>, vector<64x32xf32>, vector<8x32xf32> -> vector<8x32xf32>
    %c0_8 = arith.constant 0 : index
    %c0_9 = arith.constant 0 : index
    %13 = vector.load %arg5[%c0_8, %c0_9] : memref<1x32xf32, #tpu.memory_space<vmem>>, vector<1x32xf32>
    %14 = vector.broadcast %13 : vector<1x32xf32> to vector<8x32xf32>
    %15 = arith.addf %12, %14 : vector<8x32xf32>
    %cst_10 = arith.constant 0.000000e+00 : f32
    %16 = vector.broadcast %cst_10 : f32 to vector<8x32xf32>
    %17 = arith.maximumf %15, %16 : vector<8x32xf32>
    %c0_11 = arith.constant 0 : index
    %c0_12 = arith.constant 0 : index
    %18 = vector.load %arg6[%c0_11, %c0_12] : memref<1x32xf32, #tpu.memory_space<vmem>>, vector<1x32xf32>
    %cst_13 = arith.constant dense<0.000000e+00> : vector<1x8xf32>
    %19 = tpu.matmul %18, %17, %cst_13 {dimension_numbers = #tpu.dot_dimension_numbers<[1], [1], [0], [0], [0, 0, 1, 0], [], []>} : vector<1x32xf32>, vector<8x32xf32>, vector<1x8xf32> -> vector<1x8xf32>
    %c0_14 = arith.constant 0 : index
    %c0_15 = arith.constant 0 : index
    %20 = vector.load %arg7[%c0_14, %c0_15] : memref<1x1xf32, #tpu.memory_space<vmem>>, vector<1x1xf32>
    %21 = vector.broadcast %20 : vector<1x1xf32> to vector<1x8xf32>
    %22 = arith.addf %19, %21 : vector<1x8xf32>
    %cst_16 = arith.constant 0.000000e+00 : f32
    %23 = vector.broadcast %cst_16 : f32 to vector<1x8xf32>
    %24 = arith.subf %23, %22 : vector<1x8xf32>
    %25 = math.exp %24 : vector<1x8xf32>
    %cst_17 = arith.constant 1.000000e+00 : f32
    %26 = vector.broadcast %cst_17 : f32 to vector<1x8xf32>
    %27 = arith.addf %26, %25 : vector<1x8xf32>
    %cst_18 = arith.constant 1.000000e+00 : f32
    %28 = vector.broadcast %cst_18 : f32 to vector<1x8xf32>
    %29 = arith.divf %28, %27 : vector<1x8xf32>
    %c0_19 = arith.constant 0 : index
    %30 = arith.index_cast %c0_i32 : i32 to index
    %c0_20 = arith.constant 0 : index
    %31 = vector.load %arg8[%c0_19, %30, %c0_20] : memref<1x1x8xf32, #tpu.memory_space<vmem>>, vector<1x1x8xf32>
    %32 = vector.shape_cast %31 : vector<1x1x8xf32> to vector<1x8xf32>
    %33 = vector.shape_cast %29 : vector<1x8xf32> to vector<1x1x8xf32>
    tpu.vector_store %arg8[%c0_19, %30, %c0_20], %33 {strides = array<i32>} : memref<1x1x8xf32, #tpu.memory_space<vmem>>, vector<1x1x8xf32>,
    %c1_i32 = arith.constant 1 : i32
    return
  }
  func.func @transform_0(%arg0: i32) -> (i32, i32) {
    %c0_i32 = arith.constant 0 : i32
    %c0_i32_0 = arith.constant 0 : i32
    return %arg0, %c0_i32 : i32, i32
  }
  func.func @transform_1(%arg0: i32) -> (i32, i32) {
    %c0_i32 = arith.constant 0 : i32
    %c0_i32_0 = arith.constant 0 : i32
    %c0_i32_1 = arith.constant 0 : i32
    return %c0_i32, %c0_i32_0 : i32, i32
  }
  func.func @transform_2(%arg0: i32) -> (i32, i32) {
    %c0_i32 = arith.constant 0 : i32
    %c0_i32_0 = arith.constant 0 : i32
    %c0_i32_1 = arith.constant 0 : i32
    return %c0_i32, %c0_i32_0 : i32, i32
  }
  func.func @transform_3(%arg0: i32) -> (i32, i32) {
    %c0_i32 = arith.constant 0 : i32
    %c0_i32_0 = arith.constant 0 : i32
    %c0_i32_1 = arith.constant 0 : i32
    return %c0_i32, %c0_i32_0 : i32, i32
  }
  func.func @transform_4(%arg0: i32) -> (i32, i32) {
    %c0_i32 = arith.constant 0 : i32
    %c0_i32_0 = arith.constant 0 : i32
    %c0_i32_1 = arith.constant 0 : i32
    return %c0_i32, %c0_i32_0 : i32, i32
  }
  func.func @transform_5(%arg0: i32) -> (i32, i32) {
    %c0_i32 = arith.constant 0 : i32
    %c0_i32_0 = arith.constant 0 : i32
    %c0_i32_1 = arith.constant 0 : i32
    return %c0_i32, %c0_i32_0 : i32, i32
  }
  func.func @transform_6(%arg0: i32) -> (i32, i32) {
    %c0_i32 = arith.constant 0 : i32
    %c0_i32_0 = arith.constant 0 : i32
    %c0_i32_1 = arith.constant 0 : i32
    return %c0_i32, %c0_i32_0 : i32, i32
  }
  func.func @transform_7(%arg0: i32) -> (i32, i32, i32) {
    %c0_i32 = arith.constant 0 : i32
    %c0_i32_0 = arith.constant 0 : i32
    %c0_i32_1 = arith.constant 0 : i32
    return %arg0, %c0_i32, %c0_i32_0 : i32, i32, i32
  }
}

</mosaic_0001>

<bundles_post_ra>
// kernel: tpu_custom_call.1
= control target key start
LH: loop header
LB: loop body
LE: loop exit
PB: predicated region body
PF: predicated region fallthrough
CT: control target
= control target key end

     0   :  { %s507_s0 = inlined_call_operand.vmem [shape: f32[8,32], index: 0, kind: input, shape index: {}]   ;;  %s508_s1 = inlined_call_operand.vmem [shape: f32[32,64], index: 1, kind: input, shape index: {}]   ;;  %s509_s2 = inlined_call_operand.vmem [shape: f32[1,64], index: 2, kind: input, shape index: {}]   ;;  %s510_s3 = inlined_call_operand.vmem [shape: f32[64,32], index: 3, kind: input, shape index: {}]   ;;  %s511_s4 = inlined_call_operand.vmem [shape: f32[1,32], index: 4, kind: input, shape index: {}]   ;;  %s512_s5 = inlined_call_operand.vmem [shape: f32[1,32], index: 5, kind: input, shape index: {}]   ;;  %s513_s6 = inlined_call_operand.<no memory space> [shape: f32[1,1], index: 6, kind: input, shape index: {}]   ;;  %s514_s7 = inlined_call_operand.hbm [shape: f32[1,1,8], index: 7, kind: output, shape index: {}]  }
   0x1   :  { %v12_v0 = vstv %s513_s6 }
   0x2   :  { %13 = vst [vmem:[#allocation2] sm:$0x1] %v12_v0 }
   0x3   :  { %v33_v1 = vld [vmem:[%s508_s1 + $0x18] sm:$0xff]  ;;  %v403_v2 = vmov 0.0   ;;  %v32_v3 = vld [vmem:[%s508_s1 + $0x10] sm:$0xff]  ;;  %vm404_vm0 = vmmov 0   ;;  %v31_v6 = vld [vmem:[%s508_s1 + $0x8] sm:$0xff] }
   0x4   :  { %337 = vmatprep.subr.mxu0 %v403_v2  ;;  %345 = vmatprep.mubr.msk.f32.mxu0 %vm404_vm0, %v403_v2  ;;  %v123_v4 = vld [vmem:[%s510_s3 + $0x38] sm:$0xff]  ;;  %v122_v5 = vld [vmem:[%s510_s3 + $0x30] sm:$0xff] }
   0x5   :  { %338 = vmatpush3.msra.mxu0 %v33_v1  ;;  %348 = vmatprep.subr.mxu1 %v403_v2 }
   0x6   :  { %339 = vmatprep.subr.mxu0 %v403_v2  ;;  %349 = vmatpush3.msra.mxu1 %v123_v4 }
   0x7   :  { %14 = vsyncpa [#allocation4], 0  ;;  %340 = vmatpush3.msra.mxu0 %v32_v3  ;;  %350 = vmatprep.subr.mxu1 %v403_v2  ;;  %v121_v7 = vld [vmem:[%s510_s3 + $0x28] sm:$0xff]  ;;  %v30_v8 = vld [vmem:[%s508_s1] sm:$0xff]  ;;  %vm41_vm1 = vcmask 261120   ;;  %vm131_vm2 = vcmask 523264   ;;  %v213_v28 = vlaneseq }
   0x8   :  { %341 = vmatprep.subr.mxu0 %v403_v2  ;;  %351 = vmatpush3.msra.mxu1 %v122_v5  ;;  %v29_v9 = vld [vmem:[%s507_s0] sm:$0xff]  ;;  %v119_v11 = vld [vmem:[%s510_s3 + $0x18] sm:$0xff]  ;;  %v118_v12 = vld [vmem:[%s510_s3 + $0x10] sm:$0xff]  ;;  %v405_v21 = vmov 0   ;;  %vm299_vm3 = vcmask 57344  }
   0x9   :  { %342 = vmatpush3.msra.mxu0 %v31_v6  ;;  %352 = vmatprep.subr.mxu1 %v403_v2  ;;  %v120_v10 = vld [vmem:[%s510_s3 + $0x20] sm:$0xff]  ;;  %v117_v13 = vld [vmem:[%s510_s3 + $0x8] sm:$0xff]  ;;  %v214_v29 = vshrl.u32 %v213_v28, 7 }
   0xa   :  { %343 = vmatprep.subr.mxu0 %v403_v2  ;;  %353 = vmatpush3.msra.mxu1 %v121_v7  ;;  %v116_v14 = vld [vmem:[%s510_s3] sm:$0xff] }
   0xb   :  { %344 = vmatpush3.msra.mxu0 %v30_v8  ;;  %354 = vmatprep.subr.mxu1 %v403_v2  ;;  %v315_v15 = vld [vmem:[%s509_s2] ss:$0 sm:$0xff]  ;;  %v215_v30 = vsub.s32 0, %v214_v29 }
   0xc   :  { %346 = vmatmul.mubr.msk.f32.vlgmr.msra.gmra.mxu0 %vm41_vm1, %v29_v9  ;;  %355 = vmatpush3.msra.mxu1 %v120_v10  ;;  %v207_v20 = vld [vmem:[#allocation2] sm:$0x1] }
   0xd   :  { %356 = vmatprep.subr.mxu1 %v403_v2  ;;  %364 = vmatprep.mubr.msk.f32.mxu1 %vm404_vm0, %v403_v2  ;;  %v317_v22 = vld [vmem:[%s511_s4] ss:$0 sm:$0xff]  ;;  %s406_s4 = smov [#allocation3]  }
   0xe   :  { %357 = vmatpush3.msra.mxu1 %v119_v11  ;;  %367 = vmatprep.subr.mxu0 %v403_v2  ;;  %v206_v27 = vld [vmem:[%s512_s5] sm:$0x1]  ;;  %s307_s30 = sshll.u32 %s406_s4, 4  ;;  %s308_s30 = int_to_ptr.vmem [resolvable:$true] %s307_s30 }
   0xf   :  { %358 = vmatprep.subr.mxu1 %v403_v2  ;;  %369 = vmatprep.mubr.msk.f32.mxu0 %vm404_vm0, %v403_v2  ;;  %s381_s5 = scalar_lea.vmem %s308_s30, 16  ;;  %s385_s8 = scalar_lea.vmem %s308_s30, 32 }
  0x10   :  { %359 = vmatpush3.msra.mxu1 %v118_v12  ;;  %376 = vset.pattern.permute.xlu0 %v405_v21  ;;  %p382_p0 = scmp.ne.s32.totalorder %s308_s30, %s381_s5  ;;  %p386_p1 = scmp.lt.s32.totalorder %s308_s30, %s308_s30 }
  0x11   :  { %360 = vmatprep.subr.mxu1 %v403_v2  ;;  %210 = vperm.xlu0 %376, %v207_v20   ;;  %p387_p2 = scmp.lt.s32.totalorder %s385_s8, %s381_s5 }
  0x12   :  { %361 = vmatpush3.msra.mxu1 %v117_v13 }
  0x13   :  { %362 = vmatprep.subr.mxu1 %v403_v2  ;;  %p388_p3 = por %p387_p2, %p386_p1 }
  0x14   :  { %363 = vmatpush3.msra.mxu1 %v116_v14 }
  0x15   :  { %p389_p4 = pnand %p388_p3, %p382_p0 }
  0x8c   :  { %v211_v31 = vpop.permute.xlu0 %210 }
  0x8d   :  { %v216_v32 = vrot.slane %v211_v31, %v215_v30 }
  0xcc   :  { %v111_v16 = vpop.f32.mrf.mxu0 }
  0xcd   :  { %v112_v17 = vadd.f32 %v315_v15, %v111_v16 }
  0xce   :  { %v347_v18 = vpop.f32.mrf.mxu0 }
  0xcf   :  { %v115_v19 = vmax.f32 %v112_v17, 0.0 }
  0xd1   :  { %365 = vmatmul.mubr.msk.f32.vlgmr.msra.gmra.mxu1 %vm131_vm2, %v115_v19 }
 0x191   :  { %v201_v23 = vpop.f32.mrf.mxu1 }
 0x192   :  { %v202_v24 = vadd.f32 %v317_v22, %v201_v23 }
 0x193   :  { %v366_v25 = vpop.f32.mrf.mxu1 }
 0x194   :  { %v205_v26 = vmax.f32 %v202_v24, 0.0 }
 0x196   :  { %368 = vmatpush3.xpose.msk.msra.mxu0 %vm41_vm1, %v205_v26 }
 0x199   :  { %370 = vmatmul.mubr.msk.f32.vlgmr.msra.gmra.mxu0 %vm41_vm1, %v206_v27 }
 0x259   :  { %v289_v33 = vpop.f32.mrf.mxu0 }
 0x25a   :  { %v290_v34 = vadd.f32 %v289_v33, %v216_v32 }
 0x25b   :  { %v371_v35 = vpop.f32.mrf.mxu0 }
 0x25c   :  { %v293_v36 = vsub.f32 0.0, %v290_v34 }
 0x25e   :  { %v294_v37 = vmul.f32 1.442695, %v293_v36 }
 0x260   :  { %377 = vpow2.f32 %v294_v37 }
 0x26d   :  { %v378_v38 = vpop.eup %377 }
 0x26e   :  { %v296_v39 = vadd.f32 1.0, %v378_v38 }
 0x270   :  { %379 = vrcp.f32 %v296_v39 }
 0x27d   :  { %v380_v40 = vpop.eup %379 }
 0x27e   :  { %300 = vst.msk [vmem:[#allocation3] sm:$0x1] %vm299_vm3, %v380_v40 }
 0x27f   :  { %392 = shalt.err (!%p389_p4)
}
 0x280   :  { %310 = dma.vmem_to_hbm [thread:$0]  %s308_s30, 16, %s514_s7, [#allocation4]  }
 0x281   :  { %401 = dma.done.wait [#allocation4], 16  }
 0x282   :  { %402 = vsyncadd [#allocation4], 4294967280 }
 0x283   :  { %314 = vsyncpa [#allocation4], 1 }

</bundles_post_ra>
